<compile_context>
chip_gen: v7x
topology: tpu7x:2x2x1
jax: 0.10.0
libtpu: 0.0.40
codegen_flags: <defaults>
</compile_context>

<pallas_src>
import functools

import jax
import jax.numpy as jnp
from jax.experimental import pallas as pl
from jax.experimental.pallas import tpu as pltpu


def _mean_std_kernel(x_ref, mean_ref, std_ref, sum_ref, sq_ref, *,
                     n_total, cb, col_mask_needed):
    k = pl.program_id(1)

    @pl.when(k == 0)
    def _init():
        sum_ref[...] = jnp.zeros_like(sum_ref)
        sq_ref[...] = jnp.zeros_like(sq_ref)

    xb = x_ref[...].astype(jnp.float32)  # (rb, cb)
    if col_mask_needed:
        # Zero out lanes past the true row length N (tail reduction block).
        col = k * cb + jax.lax.broadcasted_iota(jnp.int32, xb.shape, 1)
        xb = jnp.where(col < n_total, xb, jnp.float32(0.0))

    # Fold the cb lanes into lane-wide (rb, 128) partial accumulators with
    # aligned 128-lane slices: pure VALU work, no per-step cross-lane reduce,
    # no per-step narrow (rb, 1) read-modify-write.
    s_acc = sum_ref[...]
    q_acc = sq_ref[...]
    for c in range(cb // 128):
        xs = xb[:, c * 128:(c + 1) * 128]
        s_acc = s_acc + xs
        q_acc = q_acc + xs * xs
    sum_ref[...] = s_acc
    sq_ref[...] = q_acc

    @pl.when(k == pl.num_programs(1) - 1)
    def _finalize():
        n = jnp.float32(n_total)
        s = jnp.sum(sum_ref[...], axis=-1, keepdims=True)   # (rb, 1)
        q = jnp.sum(sq_ref[...], axis=-1, keepdims=True)    # (rb, 1)
        mean = s / n
        # unbiased variance, matching torch.Tensor.std() default (ddof=1)
        var = (q - s * mean) / (n - 1.0)
        var = jnp.maximum(var, 0.0)  # guard tiny negative rounding error
        mean_ref[...] = mean.astype(mean_ref.dtype)
        std_ref[...] = jnp.sqrt(var).astype(std_ref.dtype)


def _round_up(a, m):
    return -(-a // m) * m


def _cdiv(a, b):
    return -(-a // b)


def instance_mean_std_pallas(x, num_features):
    b = int(x.shape[0])
    x3 = x.reshape(b, num_features, -1)
    B, C, N = (int(s) for s in x3.shape)
    R = B * C
    flat = x3.reshape(R, N)

    itemsize = jnp.dtype(flat.dtype).itemsize
    sub = max(8, 32 // itemsize)  # sublane multiple: f32->8, bf16->16, int8->32

    # ---- block sizing ------------------------------------------------------
    tile_bytes = 4 << 20   # ~4 MiB input tile; 2x double-buffered = 8 MiB
    cb_max = 8192          # 32 KiB contiguous per row; bounds the lane unroll

    # Grow the lane (reduction) block toward the full row length first so the
    # per-row DMA chunks are as contiguous as possible.
    cb = min(_round_up(N, 128), cb_max,
             max(128, (tile_bytes // (sub * itemsize)) // 128 * 128))
    # Spend the remaining tile budget on rows.
    rb_budget = max(sub, (tile_bytes // (cb * itemsize)) // sub * sub)
    rb = min(rb_budget, _round_up(R, sub), 4096)
    # Megacore (v7x has 2 TensorCores): make sure the parallel row axis has at
    # least 2 blocks whenever R allows it.
    if _cdiv(R, rb) < 2 and R >= 2 * sub:
        rb = _round_up(_cdiv(R, 2), sub)

    grid = (_cdiv(R, rb), _cdiv(N, cb))

    kernel = functools.partial(
        _mean_std_kernel,
        n_total=N,
        cb=cb,
        col_mask_needed=(N % cb != 0),
    )

    mean2, std2 = pl.pallas_call(
        kernel,
        out_shape=(
            jax.ShapeDtypeStruct((R, 1), x.dtype),
            jax.ShapeDtypeStruct((R, 1), x.dtype),
        ),
        grid_spec=pltpu.PrefetchScalarGridSpec(
            num_scalar_prefetch=0,
            grid=grid,
            in_specs=[pl.BlockSpec((rb, cb), lambda i, k: (i, k))],
            out_specs=[
                pl.BlockSpec((rb, 1), lambda i, k: (i, 0)),
                pl.BlockSpec((rb, 1), lambda i, k: (i, 0)),
            ],
            scratch_shapes=[
                pltpu.VMEM((rb, 128), jnp.float32),  # lane-wide running sum
                pltpu.VMEM((rb, 128), jnp.float32),  # lane-wide running sum of squares
            ],
        ),
        compiler_params=pltpu.CompilerParams(
            dimension_semantics=("parallel", "arbitrary"),
            vmem_limit_bytes=48 * 1024 * 1024,
        ),
    )(flat)

    return mean2.reshape(B, C), std2.reshape(B, C)


class InstanceMeanStd:
    """Mirror of the PyTorch module: forward(x) -> (mean, std) per (sample, feature)."""

    def __init__(self, num_features):
        self.num_features = num_features

    def __call__(self, x):
        return instance_mean_std_pallas(x, self.num_features)


if __name__ == "__main__":
    key = jax.random.PRNGKey(0)

    # --- test 1: small image-like input, single reduction block -------------
    B, C, H, W = 2, 4, 16, 16
    x = jax.random.normal(key, (B, C, H, W), dtype=jnp.float32)

    mod = InstanceMeanStd(C)
    mean, std = mod(x)
    mean, std = jax.block_until_ready((mean, std))

    xr = x.reshape(B, C, -1)
    ref_mean = xr.mean(axis=-1)
    ref_std = jnp.std(xr, axis=-1, ddof=1)  # unbiased, like torch.std()

    assert mean.shape == (B, C) and std.shape == (B, C), (mean.shape, std.shape)
    assert jnp.allclose(mean, ref_mean, atol=1e-5, rtol=1e-5)
    assert jnp.allclose(std, ref_std, atol=1e-4, rtol=1e-4)

    # --- test 2: larger spatial extent (contiguous full-row tile) -----------
    x2 = jax.random.normal(jax.random.PRNGKey(0), (2, 4, 64, 64), dtype=jnp.float32)
    mean2, std2 = instance_mean_std_pallas(x2, 4)
    mean2, std2 = jax.block_until_ready((mean2, std2))

    x2r = x2.reshape(2, 4, -1)
    assert jnp.allclose(mean2, x2r.mean(axis=-1), atol=1e-5, rtol=1e-5)
    assert jnp.allclose(std2, jnp.std(x2r, axis=-1, ddof=1), atol=1e-4, rtol=1e-4)

    # --- test 3: awkward shape (N=784 not /128, R=15 not /8) -> masking path -
    x3 = jax.random.normal(jax.random.PRNGKey(0), (3, 5, 28, 28), dtype=jnp.float32)
    mean3, std3 = instance_mean_std_pallas(x3, 5)
    mean3, std3 = jax.block_until_ready((mean3, std3))

    x3r = x3.reshape(3, 5, -1)
    assert jnp.allclose(mean3, x3r.mean(axis=-1), atol=1e-5, rtol=1e-5)
    assert jnp.allclose(std3, jnp.std(x3r, axis=-1, ddof=1), atol=1e-4, rtol=1e-4)

    print("KERNEL_OK")
</pallas_src>

<mosaic_0001>
module attributes {stable_mosaic.version = 11 : i64} {
  func.func @_mean_std_kernel(%arg0: i32, %arg1: i32, %arg2: memref<8x256xf32, #tpu.memory_space<vmem>>, %arg3: memref<8x1xf32, #tpu.memory_space<vmem>>, %arg4: memref<8x1xf32, #tpu.memory_space<vmem>>, %arg5: memref<8x128xf32, #tpu.memory_space<vmem>>, %arg6: memref<8x128xf32, #tpu.memory_space<vmem>>) attributes {dimension_semantics = [#tpu.dimension_semantics<parallel>, #tpu.dimension_semantics<arbitrary>], iteration_bounds = array<i64: 1, 1>, scalar_prefetch = 0 : i64, scratch_operands = 2 : i64, tpu.core_type = #tpu.core_type<tc>, window_params = [{transform_indices = @transform_0, window_bounds = array<i64: 8, 256>}, {transform_indices = @transform_1, window_bounds = array<i64: 8, 1>}, {transform_indices = @transform_2, window_bounds = array<i64: 8, 1>}]} {
    %c0_i32 = arith.constant 0 : i32
    %0 = arith.cmpi eq, %arg1, %c0_i32 : i32
    %1 = arith.extui %0 : i1 to i32
    %c0_i32_0 = arith.constant 0 : i32
    %2 = arith.cmpi ne, %1, %c0_i32_0 : i32
    scf.if %2 {
      %cst = arith.constant 0.000000e+00 : f32
      %19 = vector.broadcast %cst : f32 to vector<8x128xf32>
      %c0_12 = arith.constant 0 : index
      %c0_13 = arith.constant 0 : index
      %20 = vector.load %arg5[%c0_12, %c0_13] : memref<8x128xf32, #tpu.memory_space<vmem>>, vector<8x128xf32>
      tpu.vector_store %arg5[%c0_12, %c0_13], %19 {strides = array<i32>} : memref<8x128xf32, #tpu.memory_space<vmem>>, vector<8x128xf32>,
      %cst_14 = arith.constant 0.000000e+00 : f32
      %21 = vector.broadcast %cst_14 : f32 to vector<8x128xf32>
      %c0_15 = arith.constant 0 : index
      %c0_16 = arith.constant 0 : index
      %22 = vector.load %arg6[%c0_15, %c0_16] : memref<8x128xf32, #tpu.memory_space<vmem>>, vector<8x128xf32>
      tpu.vector_store %arg6[%c0_15, %c0_16], %21 {strides = array<i32>} : memref<8x128xf32, #tpu.memory_space<vmem>>, vector<8x128xf32>,
    } else {
    }
    %c0 = arith.constant 0 : index
    %c0_1 = arith.constant 0 : index
    %3 = vector.load %arg2[%c0, %c0_1] : memref<8x256xf32, #tpu.memory_space<vmem>>, vector<8x256xf32>
    %c0_2 = arith.constant 0 : index
    %c0_3 = arith.constant 0 : index
    %4 = vector.load %arg5[%c0_2, %c0_3] : memref<8x128xf32, #tpu.memory_space<vmem>>, vector<8x128xf32>
    %c0_4 = arith.constant 0 : index
    %c0_5 = arith.constant 0 : index
    %5 = vector.load %arg6[%c0_4, %c0_5] : memref<8x128xf32, #tpu.memory_space<vmem>>, vector<8x128xf32>
    %6 = vector.extract_strided_slice %3 {offsets = [0, 0], sizes = [8, 128], strides = [1, 1]} : vector<8x256xf32> to vector<8x128xf32>
    %7 = arith.addf %4, %6 : vector<8x128xf32>
    %8 = arith.mulf %6, %6 : vector<8x128xf32>
    %9 = arith.addf %5, %8 : vector<8x128xf32>
    %10 = vector.extract_strided_slice %3 {offsets = [0, 128], sizes = [8, 128], strides = [1, 1]} : vector<8x256xf32> to vector<8x128xf32>
    %11 = arith.addf %7, %10 : vector<8x128xf32>
    %12 = arith.mulf %10, %10 : vector<8x128xf32>
    %13 = arith.addf %9, %12 : vector<8x128xf32>
    %c0_6 = arith.constant 0 : index
    %c0_7 = arith.constant 0 : index
    %14 = vector.load %arg5[%c0_6, %c0_7] : memref<8x128xf32, #tpu.memory_space<vmem>>, vector<8x128xf32>
    tpu.vector_store %arg5[%c0_6, %c0_7], %11 {strides = array<i32>} : memref<8x128xf32, #tpu.memory_space<vmem>>, vector<8x128xf32>,
    %c0_8 = arith.constant 0 : index
    %c0_9 = arith.constant 0 : index
    %15 = vector.load %arg6[%c0_8, %c0_9] : memref<8x128xf32, #tpu.memory_space<vmem>>, vector<8x128xf32>
    tpu.vector_store %arg6[%c0_8, %c0_9], %13 {strides = array<i32>} : memref<8x128xf32, #tpu.memory_space<vmem>>, vector<8x128xf32>,
    %c0_i32_10 = arith.constant 0 : i32
    %16 = arith.cmpi eq, %arg1, %c0_i32_10 : i32
    %17 = arith.extui %16 : i1 to i32
    %c0_i32_11 = arith.constant 0 : i32
    %18 = arith.cmpi ne, %17, %c0_i32_11 : i32
    scf.if %18 {
      %c0_12 = arith.constant 0 : index
      %c0_13 = arith.constant 0 : index
      %19 = vector.load %arg5[%c0_12, %c0_13] : memref<8x128xf32, #tpu.memory_space<vmem>>, vector<8x128xf32>
      %cst = arith.constant dense<0.000000e+00> : vector<8xf32>
      %20 = vector.multi_reduction <add>, %19, %cst [1] : vector<8x128xf32> to vector<8xf32>
      %21 = vector.shape_cast %20 : vector<8xf32> to vector<8x1xf32>
      %c0_14 = arith.constant 0 : index
      %c0_15 = arith.constant 0 : index
      %22 = vector.load %arg6[%c0_14, %c0_15] : memref<8x128xf32, #tpu.memory_space<vmem>>, vector<8x128xf32>
      %cst_16 = arith.constant dense<0.000000e+00> : vector<8xf32>
      %23 = vector.multi_reduction <add>, %22, %cst_16 [1] : vector<8x128xf32> to vector<8xf32>
      %24 = vector.shape_cast %23 : vector<8xf32> to vector<8x1xf32>
      %cst_17 = arith.constant 2.560000e+02 : f32
      %25 = vector.broadcast %cst_17 : f32 to vector<8x1xf32>
      %26 = arith.divf %21, %25 : vector<8x1xf32>
      %27 = arith.mulf %21, %26 : vector<8x1xf32>
      %28 = arith.subf %24, %27 : vector<8x1xf32>
      %cst_18 = arith.constant 2.560000e+02 : f32
      %cst_19 = arith.constant 1.000000e+00 : f32
      %29 = arith.subf %cst_18, %cst_19 : f32
      %30 = vector.broadcast %29 : f32 to vector<8x1xf32>
      %31 = arith.divf %28, %30 : vector<8x1xf32>
      %cst_20 = arith.constant 0.000000e+00 : f32
      %32 = vector.broadcast %cst_20 : f32 to vector<8x1xf32>
      %33 = arith.maximumf %31, %32 : vector<8x1xf32>
      %c0_21 = arith.constant 0 : index
      %c0_22 = arith.constant 0 : index
      %34 = vector.load %arg3[%c0_21, %c0_22] : memref<8x1xf32, #tpu.memory_space<vmem>>, vector<8x1xf32>
      tpu.vector_store %arg3[%c0_21, %c0_22], %26 {strides = array<i32>} : memref<8x1xf32, #tpu.memory_space<vmem>>, vector<8x1xf32>,
      %35 = math.sqrt %33 : vector<8x1xf32>
      %c0_23 = arith.constant 0 : index
      %c0_24 = arith.constant 0 : index
      %36 = vector.load %arg4[%c0_23, %c0_24] : memref<8x1xf32, #tpu.memory_space<vmem>>, vector<8x1xf32>
      tpu.vector_store %arg4[%c0_23, %c0_24], %35 {strides = array<i32>} : memref<8x1xf32, #tpu.memory_space<vmem>>, vector<8x1xf32>,
    } else {
    }
    return
  }
  func.func @transform_0(%arg0: i32, %arg1: i32) -> (i32, i32) {
    %c0_i32 = arith.constant 0 : i32
    return %arg0, %arg1 : i32, i32
  }
  func.func @transform_1(%arg0: i32, %arg1: i32) -> (i32, i32) {
    %c0_i32 = arith.constant 0 : i32
    %c0_i32_0 = arith.constant 0 : i32
    return %arg0, %c0_i32 : i32, i32
  }
  func.func @transform_2(%arg0: i32, %arg1: i32) -> (i32, i32) {
    %c0_i32 = arith.constant 0 : i32
    %c0_i32_0 = arith.constant 0 : i32
    return %arg0, %c0_i32 : i32, i32
  }
}

</mosaic_0001>

<bundles_post_ra>
// kernel: tpu_custom_call.1
= control target key start
LH: loop header
LB: loop body
LE: loop exit
PB: predicated region body
PF: predicated region fallthrough
CT: control target
= control target key end

     0   :  { %8 = vsyncpa [#allocation5], 0  ;;  %s102_s9 = smov [#allocation4]   ;;  %s138_s0 = inlined_call_operand.hbm [shape: f32[8,256], index: 0, kind: input, shape index: {}]   ;;  %s139_s1 = inlined_call_operand.vmem [shape: f32[8,1], index: 1, kind: output, shape index: {0}]   ;;  %s140_s2 = inlined_call_operand.vmem [shape: f32[8,1], index: 2, kind: output, shape index: {1}]  }
   0x1   :  { %s15_s10 = sshll.u32 %s102_s9, 4  ;;  %s78_s13 = scalar_lea.hbm %s138_s0, 256  ;;  %s16_s10 = int_to_ptr.vmem [resolvable:$true] %s15_s10 }
   0x2   :  { %p79_p0 = scmp.ne.s32.totalorder %s138_s0, %s78_s13  ;;  %p82_p1 = scmp.lt.u32.totalorder %s78_s13, %s138_s0 }
   0x4   :  { %p84_p2 = pnand %p82_p1, %p79_p0 }
   0x6   :  { %87 = shalt.err (!%p84_p2)
}
   0x7   :  { %s88_s18 = scalar_lea.vmem %s16_s10, 256  ;;  %p93_p4 = scmp.lt.s32.totalorder %s16_s10, %s16_s10 }
   0x8   :  { %p89_p3 = scmp.ne.s32.totalorder %s16_s10, %s88_s18  ;;  %p94_p5 = scmp.lt.s32.totalorder %s88_s18, %s88_s18 }
   0xa   :  { %p95_p6 = por %p94_p5, %p93_p4 }
   0xc   :  { %p96_p7 = pnand %p95_p6, %p89_p3 }
   0xe   :  { %99 = shalt.err (!%p96_p7)
}
   0xf   :  { %18 = dma.hbm_to_vmem [thread:$0]  %s138_s0, 256, %s16_s10, [#allocation5]  }
  0x10   :  { %100 = dma.done.wait [#allocation5], 256  }
  0x11   :  { %101 = vsyncadd [#allocation5], 4294967040  ;;  %v28_v0 = vld [vmem:[#allocation4] sm:$0xff]  ;;  %v29_v1 = vld [vmem:[#allocation4 + $0x8] sm:$0xff]  ;;  %vm56_vm0 = vcmask 7168  }
  0x12   :  { %v35_v2 = vadd.f32 %v29_v1, %v28_v0  ;;  %v36_v3 = vmul.f32 %v29_v1, %v29_v1  ;;  %v33_v4 = vmul.f32 %v28_v0, %v28_v0 }
  0x14   :  { %44 = vadd.xlane.f32.xlu0 %v35_v2  ;;  %v37_v5 = vadd.f32 %v36_v3, %v33_v4 }
  0x18   :  { %47 = vadd.xlane.f32.xlu0 %v37_v5 }
  0xa1   :  { %v45_v6 = vpop.xlane.xlu0 %44 }
  0xa2   :  { %v50_v7 = vmul.f32 0.00390625, %v45_v6 }
  0xa4   :  { %v51_v8 = vmul.f32 %v50_v7, %v45_v6  ;;  %57 = vst.msk [vmem:[%s139_s1] sm:$0xff] %vm56_vm0, %v50_v7 }
  0xa5   :  { %v48_v9 = vpop.xlane.xlu0 %47 }
  0xa6   :  { %v52_v10 = vsub.f32 %v48_v9, %v51_v8 }
  0xa8   :  { %v54_v11 = vmul.f32 0.003921569, %v52_v10 }
  0xaa   :  { %v55_v12 = vmax.f32 %v54_v11, 0.0 }
  0xac   :  { %76 = vrsqrt.f32 %v55_v12  ;;  %vm60_vm1 = vcmp.eq.f32.partialorder %v55_v12, inf  ;;  %v63_v15 = vand.u32 2147483648, %v55_v12  ;;  %vm62_vm2 = vcmp.eq.f32.partialorder %v55_v12, 0.0 }
  0xb6   :  { %v77_v13 = vpop.eup %76 }
  0xb7   :  { %v59_v14 = vmul.f32 %v77_v13, %v55_v12 }
  0xb9   :  { %v61_v16 = vsel %vm60_vm1, %v55_v12, %v59_v14 }
  0xba   :  { %v64_v17 = vsel %vm62_vm2, %v63_v15, %v61_v16 }
  0xbb   :  { %65 = vst.msk [vmem:[%s140_s2] sm:$0xff] %vm56_vm0, %v64_v17 }
  0xbc   :  { %74 = vsyncpa [#allocation5], 1 }

</bundles_post_ra>
